<compile_context>
chip_gen: v6e
topology: v6e:2x2x1
jax: 0.10.0
libtpu: 0.0.40
codegen_flags: <defaults>
</compile_context>

<pallas_src>
import jax
import jax.numpy as jnp
from jax.experimental import pallas as pl
from jax.experimental.pallas import tpu as pltpu

EPS = 1e-8  # matches torch.nn.CosineSimilarity default eps


def _cos_sim_kernel(a_ref, b_ref, o_ref):
    # a_ref / b_ref: (TB, D) dense tiles of already-gathered embedding rows.
    a = a_ref[...].astype(jnp.float32)                    # (TB, D)
    b = b_ref[...].astype(jnp.float32)                    # (TB, D)

    dot = jnp.sum(a * b, axis=-1)                         # (TB,) lane reduction
    na2 = jnp.sum(a * a, axis=-1)                         # (TB,)
    nb2 = jnp.sum(b * b, axis=-1)                         # (TB,)

    # cos = dot / max(||a||*||b||, eps)  ==  dot * rsqrt(max(na2*nb2, eps^2))
    denom2 = jnp.maximum(na2 * nb2, jnp.float32(EPS * EPS))
    cos = dot * jax.lax.rsqrt(denom2)                     # (TB,)

    # Lane-dense store: one (1, TB) unmasked row write per grid step.
    o_ref[...] = cos[None, :]


def genre2vec_forward(embedding, context, input_genres, context_genres,
                      *, block_b=None):
    """Pallas implementation of Genre2Vec.forward.

    embedding, context: (vocab, enc_size) float32 tables
    input_genres, context_genres: (B,) int indices
    returns: (B,) float32 cosine similarities
    """
    B = input_genres.shape[0]
    V, D = embedding.shape

    if block_b is None:
        block_b = 512 if B >= 512 else 128      # multiple of 128 -> lane-dense
    num_blocks = pl.cdiv(B, block_b)
    b_pad = num_blocks * block_b

    inp = jnp.asarray(input_genres, jnp.int32)
    ctx = jnp.asarray(context_genres, jnp.int32)
    if b_pad != B:
        pad = b_pad - B
        inp = jnp.concatenate([inp, jnp.zeros((pad,), jnp.int32)])
        ctx = jnp.concatenate([ctx, jnp.zeros((pad,), jnp.int32)])

    # Gather once in the wrapper; the kernel then streams dense (TB, D) tiles.
    a = jnp.take(embedding, inp, axis=0)        # (b_pad, D)
    b = jnp.take(context, ctx, axis=0)          # (b_pad, D)

    out = pl.pallas_call(
        _cos_sim_kernel,
        out_shape=jax.ShapeDtypeStruct((1, b_pad), jnp.float32),
        grid_spec=pl.GridSpec(
            grid=(num_blocks,),
            in_specs=[
                pl.BlockSpec((block_b, D), lambda i: (i, 0)),
                pl.BlockSpec((block_b, D), lambda i: (i, 0)),
            ],
            out_specs=pl.BlockSpec((1, block_b), lambda i: (0, i)),
        ),
        compiler_params=pltpu.CompilerParams(
            dimension_semantics=("parallel",)),   # independent rows -> 2 TCs on v7x
    )(a, b)

    return out[0, :B]


def genre2vec_reference(embedding, context, input_genres, context_genres):
    a = embedding[input_genres]
    b = context[context_genres]
    dot = jnp.sum(a * b, axis=1)
    denom = jnp.maximum(
        jnp.linalg.norm(a, axis=1) * jnp.linalg.norm(b, axis=1), EPS)
    return dot / denom


if __name__ == "__main__":
    # Small, deterministic setup consistent with the module's __init__.
    input_size = 64     # vocab size
    enc_size = 256      # default enc_size in Genre2Vec
    batch = 8

    key = jax.random.PRNGKey(0)
    k_emb, k_ctx, k_i, k_c = jax.random.split(key, 4)

    # nn.Embedding default init: N(0, 1)
    embedding = jax.random.normal(k_emb, (input_size, enc_size), jnp.float32)
    context = jax.random.normal(k_ctx, (input_size, enc_size), jnp.float32)

    input_genres = jax.random.randint(k_i, (batch,), 0, input_size, jnp.int32)
    context_genres = jax.random.randint(k_c, (batch,), 0, input_size, jnp.int32)

    out = genre2vec_forward(embedding, context, input_genres, context_genres)
    out = jax.block_until_ready(out)

    ref = genre2vec_reference(embedding, context, input_genres, context_genres)
    assert out.shape == (batch,)
    assert jnp.allclose(out, ref, atol=1e-5, rtol=1e-5), (out, ref)

    print("KERNEL_OK")
</pallas_src>

<mosaic_0001>
module attributes {stable_mosaic.version = 11 : i64} {
  func.func @_cos_sim_kernel(%arg0: i32, %arg1: memref<128x256xf32, #tpu.memory_space<vmem>>, %arg2: memref<128x256xf32, #tpu.memory_space<vmem>>, %arg3: memref<1x128xf32, #tpu.memory_space<vmem>>) attributes {dimension_semantics = [#tpu.dimension_semantics<parallel>], iteration_bounds = array<i64: 1>, scalar_prefetch = 0 : i64, scratch_operands = 0 : i64, tpu.core_type = #tpu.core_type<tc>, window_params = [{transform_indices = @transform_0, window_bounds = array<i64: 128, 256>}, {transform_indices = @transform_1, window_bounds = array<i64: 128, 256>}, {transform_indices = @transform_2, window_bounds = array<i64: 1, 128>}]} {
    %c0 = arith.constant 0 : index
    %c0_0 = arith.constant 0 : index
    %0 = vector.load %arg1[%c0, %c0_0] : memref<128x256xf32, #tpu.memory_space<vmem>>, vector<128x256xf32>
    %c0_1 = arith.constant 0 : index
    %c0_2 = arith.constant 0 : index
    %1 = vector.load %arg2[%c0_1, %c0_2] : memref<128x256xf32, #tpu.memory_space<vmem>>, vector<128x256xf32>
    %2 = arith.mulf %0, %1 : vector<128x256xf32>
    %cst = arith.constant dense<0.000000e+00> : vector<128xf32>
    %3 = vector.multi_reduction <add>, %2, %cst [1] : vector<128x256xf32> to vector<128xf32>
    %4 = arith.mulf %0, %0 : vector<128x256xf32>
    %cst_3 = arith.constant dense<0.000000e+00> : vector<128xf32>
    %5 = vector.multi_reduction <add>, %4, %cst_3 [1] : vector<128x256xf32> to vector<128xf32>
    %6 = arith.mulf %1, %1 : vector<128x256xf32>
    %cst_4 = arith.constant dense<0.000000e+00> : vector<128xf32>
    %7 = vector.multi_reduction <add>, %6, %cst_4 [1] : vector<128x256xf32> to vector<128xf32>
    %8 = arith.mulf %5, %7 : vector<128xf32>
    %cst_5 = arith.constant 1.000000e-16 : f32
    %9 = vector.broadcast %cst_5 : f32 to vector<128xf32>
    %10 = arith.maximumf %8, %9 : vector<128xf32>
    %11 = math.rsqrt %10 : vector<128xf32>
    %12 = arith.mulf %3, %11 : vector<128xf32>
    %13 = vector.shape_cast %12 : vector<128xf32> to vector<1x128xf32>
    %c0_6 = arith.constant 0 : index
    %c0_7 = arith.constant 0 : index
    %14 = vector.load %arg3[%c0_6, %c0_7] : memref<1x128xf32, #tpu.memory_space<vmem>>, vector<1x128xf32>
    tpu.vector_store %arg3[%c0_6, %c0_7], %13 {strides = array<i32>} : memref<1x128xf32, #tpu.memory_space<vmem>>, vector<1x128xf32>,
    return
  }
  func.func @transform_0(%arg0: i32) -> (i32, i32) {
    %c0_i32 = arith.constant 0 : i32
    %c0_i32_0 = arith.constant 0 : i32
    return %arg0, %c0_i32 : i32, i32
  }
  func.func @transform_1(%arg0: i32) -> (i32, i32) {
    %c0_i32 = arith.constant 0 : i32
    %c0_i32_0 = arith.constant 0 : i32
    return %arg0, %c0_i32 : i32, i32
  }
  func.func @transform_2(%arg0: i32) -> (i32, i32) {
    %c0_i32 = arith.constant 0 : i32
    %c0_i32_0 = arith.constant 0 : i32
    return %c0_i32, %arg0 : i32, i32
  }
}

</mosaic_0001>

<bundles_post_ra>
// kernel: tpu_custom_call.1
= control target key start
LH: loop header
LB: loop body
LE: loop exit
PB: predicated region body
PF: predicated region fallthrough
CT: control target
= control target key end

     0   :  { %7 = vsyncpa [#allocation3], 0  ;;  %s1033_s0 = inlined_call_operand.hbm [shape: f32[128,256], index: 0, kind: input, shape index: {}]   ;;  %s1034_s1 = inlined_call_operand.hbm [shape: f32[128,256], index: 1, kind: input, shape index: {}]   ;;  %s1035_s2 = inlined_call_operand.hbm [shape: f32[1,128], index: 2, kind: output, shape index: {}]  }
   0x1   :  { %8 = vsyncpa [#allocation6], 0 }
   0x2   :  { %9 = vsyncpa [#allocation4], 0  ;;  %s656_s9 = smov [#allocation2]  }
   0x3   :  { %s15_s10 = sshll.u32 %s656_s9, 4  ;;  %s16_s10 = int_to_ptr.vmem [resolvable:$true] %s15_s10 }
   0x4   :  { %s598_s11 = scalar_lea.vmem %s16_s10, 4096  ;;  %p603_p1 = scmp.lt.s32.totalorder %s16_s10, %s16_s10 }
   0x5   :  { %p599_p0 = scmp.ne.s32.totalorder %s16_s10, %s598_s11  ;;  %p604_p2 = scmp.lt.s32.totalorder %s598_s11, %s598_s11 }
   0x7   :  { %p605_p3 = por %p604_p2, %p603_p1 }
   0x9   :  { %p606_p4 = pnand %p605_p3, %p599_p0 }
   0xb   :  { %609 = shalt.err (!%p606_p4)
}
   0xc   :  { %s657_s12 = smov 256   ;;  %s658_s13 = smov 16  }
   0xd   :  { %21 = dma.hbm_to_vmem [thread:$0]  %s1033_s0, 4096, %s16_s10, [#allocation3], %s657_s12, %s657_s12, %s658_s13  }
   0xe   :  { %s659_s16 = smov [#allocation5]  }
   0xf   :  { %s27_s17 = sshll.u32 %s659_s16, 4  ;;  %s28_s17 = int_to_ptr.vmem [resolvable:$true] %s27_s17 }
  0x10   :  { %s618_s18 = scalar_lea.vmem %s28_s17, 4096  ;;  %p623_p6 = scmp.lt.s32.totalorder %s28_s17, %s28_s17 }
  0x11   :  { %p619_p5 = scmp.ne.s32.totalorder %s28_s17, %s618_s18  ;;  %p624_p7 = scmp.lt.s32.totalorder %s618_s18, %s618_s18 }
  0x13   :  { %p625_p8 = por %p624_p7, %p623_p6 }
  0x15   :  { %p626_p9 = pnand %p625_p8, %p619_p5 }
  0x17   :  { %629 = shalt.err (!%p626_p9)
}
  0x18   :  { %33 = dma.hbm_to_vmem [thread:$0]  %s1034_s1, 4096, %s28_s17, [#allocation6], %s657_s12, %s657_s12, %s658_s13  }
  0x19   :  { %650 = dma.done.wait [#allocation3], 4096  }
  0x1a   :  { %651 = vsyncadd [#allocation3], 4294963200 }
  0x1b   :  { %652 = dma.done.wait [#allocation6], 4096  }
  0x1c   :  { %653 = vsyncadd [#allocation6], 4294963200  ;;  %v72_v0 = vld [vmem:[#allocation5] sm:$0xff]  ;;  %v73_v1 = vld [vmem:[#allocation5 + $0x8] sm:$0xff]  ;;  %vm435_vm0 = vcmask 130112   ;;  %vm442_vm1 = vcmask 195712  }
  0x1d   :  { %v40_v2 = vld [vmem:[#allocation2] sm:$0xff]  ;;  %v264_v3 = vmul.f32 %v72_v0, %v72_v0  ;;  %v265_v4 = vmul.f32 %v73_v1, %v73_v1  ;;  %v41_v5 = vld [vmem:[#allocation2 + $0x8] sm:$0xff]  ;;  %v682_v7 = vld [vmem:[#allocation5 + $0x10] sm:$0xff]  ;;  %vm449_vm2 = vcmask 261312   ;;  %vm456_vm3 = vcmask 326912   ;;  %s660_s0 = smov [#allocation7]  }
  0x1e   :  { %v184_v6 = vmul.f32 %v40_v2, %v40_v2  ;;  %v684_v8 = vld [vmem:[#allocation5 + $0x18] sm:$0xff]  ;;  %v686_v9 = vmul.f32 %v72_v0, %v40_v2  ;;  %v185_v10 = vmul.f32 %v41_v5, %v41_v5  ;;  %v266_v11 = vmul.f32 %v682_v7, %v682_v7  ;;  %v692_v13 = vld [vmem:[#allocation2 + $0x10] sm:$0xff]  ;;  %v696_v15 = vld [vmem:[#allocation5 + $0x20] sm:$0xff]  ;;  %s543_s1 = sshll.u32 %s660_s0, 4  ;;  %s544_s1 = int_to_ptr.vmem [resolvable:$true] %s543_s1 }
  0x1f   :  { %v267_v12 = vmul.f32 %v684_v8, %v684_v8  ;;  %v694_v14 = vld [vmem:[#allocation2 + $0x18] sm:$0xff]  ;;  %v698_v16 = vmul.f32 %v73_v1, %v41_v5  ;;  %v296_v17 = vadd.f32 %v265_v4, %v264_v3  ;;  %v186_v18 = vmul.f32 %v692_v13, %v692_v13  ;;  %v704_v20 = vld [vmem:[#allocation5 + $0x28] sm:$0xff]  ;;  %v706_v21 = vld [vmem:[#allocation2 + $0x20] sm:$0xff]  ;;  %s630_s21 = scalar_lea.vmem %s544_s1, 16  ;;  %s634_s22 = scalar_lea.vmem %s544_s1, 32 }
  0x20   :  { %v187_v19 = vmul.f32 %v694_v14, %v694_v14  ;;  %v708_v22 = vld [vmem:[#allocation2 + $0x28] sm:$0xff]  ;;  %v216_v23 = vadd.f32 %v185_v10, %v184_v6  ;;  %v268_v25 = vmul.f32 %v696_v15, %v696_v15  ;;  %v269_v26 = vmul.f32 %v704_v20, %v704_v20  ;;  %v718_v30 = vld [vmem:[#allocation5 + $0x30] sm:$0xff]  ;;  %v720_v31 = vld [vmem:[#allocation5 + $0x38] sm:$0xff]  ;;  %p631_p10 = scmp.ne.s32.totalorder %s544_s1, %s630_s21  ;;  %p635_p11 = scmp.lt.s32.totalorder %s544_s1, %s544_s1 }
  0x21   :  { %297 = vadd.xlane.f32.xlu1 %v296_v17  ;;  %v299_v24 = vadd.f32 %v267_v12, %v266_v11  ;;  %v188_v28 = vmul.f32 %v706_v21, %v706_v21  ;;  %v189_v29 = vmul.f32 %v708_v22, %v708_v22  ;;  %v722_v32 = vld [vmem:[#allocation2 + $0x30] sm:$0xff]  ;;  %v724_v33 = vld [vmem:[#allocation2 + $0x38] sm:$0xff]  ;;  %v270_v35 = vmul.f32 %v718_v30, %v718_v30  ;;  %v734_v40 = vld [vmem:[#allocation5 + $0x40] sm:$0xff]  ;;  %p636_p12 = scmp.lt.s32.totalorder %s634_s22, %s630_s21 }
  0x22   :  { %217 = vadd.xlane.f32.xlu0 %v216_v23  ;;  %v219_v27 = vadd.f32 %v187_v19, %v186_v18  ;;  %v302_v34 = vadd.f32 %v269_v26, %v268_v25  ;;  %v271_v36 = vmul.f32 %v720_v31, %v720_v31  ;;  %v190_v38 = vmul.f32 %v722_v32, %v722_v32  ;;  %v736_v41 = vld [vmem:[#allocation5 + $0x48] sm:$0xff]  ;;  %v738_v42 = vld [vmem:[#allocation2 + $0x40] sm:$0xff]  ;;  %v750_v50 = vld [vmem:[#allocation5 + $0x50] sm:$0xff] }
  0x23   :  { %v222_v37 = vadd.f32 %v189_v29, %v188_v28  ;;  %v191_v39 = vmul.f32 %v724_v33, %v724_v33  ;;  %v740_v43 = vld [vmem:[#allocation2 + $0x48] sm:$0xff]  ;;  %v272_v45 = vmul.f32 %v734_v40, %v734_v40  ;;  %v273_v46 = vmul.f32 %v736_v41, %v736_v41  ;;  %v752_v51 = vld [vmem:[#allocation5 + $0x58] sm:$0xff]  ;;  %v754_v52 = vld [vmem:[#allocation2 + $0x50] sm:$0xff]  ;;  %p637_p13 = por %p636_p12, %p635_p11 }
  0x24   :  { %v305_v44 = vadd.f32 %v271_v36, %v270_v35  ;;  %v192_v48 = vmul.f32 %v738_v42, %v738_v42  ;;  %v193_v49 = vmul.f32 %v740_v43, %v740_v43  ;;  %v756_v53 = vld [vmem:[#allocation2 + $0x58] sm:$0xff]  ;;  %v274_v55 = vmul.f32 %v750_v50, %v750_v50  ;;  %v766_v60 = vld [vmem:[#allocation5 + $0x60] sm:$0xff]  ;;  %v768_v61 = vld [vmem:[#allocation5 + $0x68] sm:$0xff] }
  0x25   :  { %300 = vadd.xlane.f32.xlu1 %v299_v24  ;;  %v225_v47 = vadd.f32 %v191_v39, %v190_v38  ;;  %v308_v54 = vadd.f32 %v273_v46, %v272_v45  ;;  %v275_v56 = vmul.f32 %v752_v51, %v752_v51  ;;  %v194_v58 = vmul.f32 %v754_v52, %v754_v52  ;;  %v770_v62 = vld [vmem:[#allocation2 + $0x60] sm:$0xff]  ;;  %v772_v63 = vld [vmem:[#allocation2 + $0x68] sm:$0xff]  ;;  %v782_v6 = vld [vmem:[#allocation5 + $0x70] sm:$0xff]  ;;  %p638_p0 = pnand %p637_p13, %p631_p10 }
  0x26   :  { %220 = vadd.xlane.f32.xlu0 %v219_v27  ;;  %v228_v57 = vadd.f32 %v193_v49, %v192_v48  ;;  %v195_v59 = vmul.f32 %v756_v53, %v756_v53  ;;  %v276_v1 = vmul.f32 %v766_v60, %v766_v60  ;;  %v277_v2 = vmul.f32 %v768_v61, %v768_v61  ;;  %v784_v10 = vld [vmem:[#allocation5 + $0x78] sm:$0xff]  ;;  %v786_v11 = vld [vmem:[#allocation2 + $0x70] sm:$0xff]  ;;  %v802_v27 = vld [vmem:[#allocation5 + $0x80] sm:$0xff] }
  0x27   :  { %v311_v0 = vadd.f32 %v275_v56, %v274_v55  ;;  %v196_v4 = vmul.f32 %v770_v62, %v770_v62  ;;  %v197_v5 = vmul.f32 %v772_v63, %v772_v63  ;;  %v788_v12 = vld [vmem:[#allocation2 + $0x78] sm:$0xff]  ;;  %v278_v18 = vmul.f32 %v782_v6, %v782_v6  ;;  %v804_v28 = vld [vmem:[#allocation5 + $0x88] sm:$0xff]  ;;  %v806_v29 = vld [vmem:[#allocation2 + $0x80] sm:$0xff] }
  0x28   :  { %v231_v3 = vadd.f32 %v195_v59, %v194_v58  ;;  %v314_v17 = vadd.f32 %v277_v2, %v276_v1  ;;  %v279_v19 = vmul.f32 %v784_v10, %v784_v10  ;;  %v796_v23 = vadd.f32 %v698_v16, %v686_v9  ;;  %v818_v39 = vld [vmem:[#allocation5 + $0x90] sm:$0xff]  ;;  %v824_v46 = vld [vmem:[#allocation2 + $0x98] sm:$0xff]  ;;  %v836_v58 = vld [vmem:[#allocation5 + $0xa8] sm:$0xff] }
  0x29   :  { %303 = vadd.xlane.f32.xlu1 %v302_v34  ;;  %v234_v24 = vadd.f32 %v197_v5, %v196_v4  ;;  %v198_v25 = vmul.f32 %v786_v11, %v786_v11  ;;  %v199_v26 = vmul.f32 %v788_v12, %v788_v12  ;;  %v808_v34 = vld [vmem:[#allocation2 + $0x88] sm:$0xff]  ;;  %v280_v9 = vmul.f32 %v802_v27, %v802_v27  ;;  %v822_v45 = vld [vmem:[#allocation2 + $0x90] sm:$0xff]  ;;  %v838_v59 = vld [vmem:[#allocation2 + $0xa0] sm:$0xff] }
  0x2a   :  { %223 = vadd.xlane.f32.xlu0 %v222_v37  ;;  %v317_v35 = vadd.f32 %v279_v19, %v278_v18  ;;  %v281_v16 = vmul.f32 %v804_v28, %v804_v28  ;;  %v200_v37 = vmul.f32 %v806_v29, %v806_v29  ;;  %v201_v38 = vmul.f32 %v808_v34, %v808_v34  ;;  %v850_v18 = vld [vmem:[#allocation5 + $0xb0] sm:$0xff]  ;;  %v852_v19 = vld [vmem:[#allocation5 + $0xb8] sm:$0xff] }
  0x2b   :  { %v237_v36 = vadd.f32 %v199_v26, %v198_v25  ;;  %v282_v48 = vmul.f32 %v818_v39, %v818_v39  ;;  %v202_v55 = vmul.f32 %v822_v45, %v822_v45  ;;  %v203_v56 = vmul.f32 %v824_v46, %v824_v46  ;;  %v856_v25 = vld [vmem:[#allocation2 + $0xb8] sm:$0xff] }
  0x2c   :  { %v204_v5 = vmul.f32 %v838_v59, %v838_v59  ;;  %vm463_vm4 = vcmask 392512   ;;  %vm470_vm5 = vcmask 458112   ;;  %vm477_vm6 = vcmask 523712  }
  0x2d   :  { %306 = vadd.xlane.f32.xlu1 %v305_v44  ;;  %v820_v44 = vld [vmem:[#allocation5 + $0x98] sm:$0xff]  ;;  %v243_v4 = vadd.f32 %v203_v56, %v202_v55  ;;  %vm484_vm7 = vcmask 589312   ;;  %vm491_vm8 = vcmask 654912   ;;  %vm498_vm9 = vcmask 720512  }
  0x2e   :  { %226 = vadd.xlane.f32.xlu0 %v225_v47  ;;  %v320_v47 = vadd.f32 %v281_v16, %v280_v9  ;;  %v283_v49 = vmul.f32 %v820_v44, %v820_v44  ;;  %v287_v9 = vmul.f32 %v852_v19, %v852_v19  ;;  %vm505_vm10 = vcmask 786112  }
  0x2f   :  { %vm512_vm11 = vcmask 851712   ;;  %vm519_vm12 = vcmask 917312   ;;  %vm526_vm13 = vcmask 982912   ;;  %vm533_vm14 = vcmask 1048512  }
  0x30   :  { %v323_v1 = vadd.f32 %v283_v49, %v282_v48  ;;  %v870_v48 = vld [vmem:[#allocation2 + $0xc0] sm:$0xff]  ;;  %v872_v49 = vld [vmem:[#allocation2 + $0xc8] sm:$0xff] }
  0x31   :  { %309 = vadd.xlane.f32.xlu1 %v308_v54  ;;  %v240_v54 = vadd.f32 %v201_v38, %v200_v37  ;;  %v207_v37 = vmul.f32 %v856_v25, %v856_v25  ;;  %v866_v38 = vld [vmem:[#allocation5 + $0xc0] sm:$0xff]  ;;  %1049 = vst [vmem:[#allocation13_spill] sm:$0xff] %v870_v48  ;;  %1050 = vst [vmem:[#allocation14_spill] sm:$0xff] %v872_v49 }
  0x32   :  { %229 = vadd.xlane.f32.xlu0 %v228_v57  ;;  %v834_v57 = vld [vmem:[#allocation5 + $0xa0] sm:$0xff]  ;;  %1047 = vst [vmem:[#allocation11_spill] sm:$0xff] %v866_v38  ;;  %v288_v55 = vmul.f32 %v866_v38, %v866_v38  ;;  %v900_v38 = vld [vmem:[#allocation5 + $0xe8] sm:$0xff] }
  0x33   :  { %v284_v2 = vmul.f32 %v834_v57, %v834_v57  ;;  %1055 = vst [vmem:[#allocation19_spill] sm:$0xff] %v900_v38 }
  0x35   :  { %312 = vadd.xlane.f32.xlu1 %v311_v0  ;;  %v840_v0 = vld [vmem:[#allocation2 + $0xa8] sm:$0xff] }
  0x36   :  { %232 = vadd.xlane.f32.xlu0 %v231_v3  ;;  %v285_v3 = vmul.f32 %v836_v58, %v836_v58 }
  0x38   :  { %v326_v26 = vadd.f32 %v285_v3, %v284_v2  ;;  %v208_v2 = vmul.f32 %v870_v48, %v870_v48  ;;  %v209_v3 = vmul.f32 %v872_v49, %v872_v49  ;;  %v898_v49 = vld [vmem:[#allocation5 + $0xe0] sm:$0xff] }
  0x39   :  { %315 = vadd.xlane.f32.xlu1 %v314_v17  ;;  %v205_v17 = vmul.f32 %v840_v0, %v840_v0  ;;  %1054 = vst [vmem:[#allocation18_spill] sm:$0xff] %v898_v49 }
  0x3a   :  { %235 = vadd.xlane.f32.xlu0 %v234_v24  ;;  %v854_v24 = vld [vmem:[#allocation2 + $0xb0] sm:$0xff] }
  0x3b   :  { %v246_v16 = vadd.f32 %v205_v17, %v204_v5  ;;  %v884_v5 = vld [vmem:[#allocation5 + $0xd8] sm:$0xff]  ;;  %v886_v17 = vld [vmem:[#allocation2 + $0xd0] sm:$0xff] }
  0x3c   :  { %1052 = vst [vmem:[#allocation16_spill] sm:$0xff] %v884_v5 }
  0x3d   :  { %318 = vadd.xlane.f32.xlu1 %v317_v35  ;;  %v286_v35 = vmul.f32 %v850_v18, %v850_v18 }
  0x3e   :  { %238 = vadd.xlane.f32.xlu0 %v237_v36  ;;  %v206_v36 = vmul.f32 %v854_v24, %v854_v24 }
  0x41   :  { %321 = vadd.xlane.f32.xlu1 %v320_v47  ;;  %v868_v47 = vld [vmem:[#allocation5 + $0xc8] sm:$0xff] }
  0x42   :  { %241 = vadd.xlane.f32.xlu0 %v240_v54  ;;  %1048 = vst [vmem:[#allocation12_spill] sm:$0xff] %v868_v47  ;;  %v329_v54 = vadd.f32 %v287_v9, %v286_v35  ;;  %v289_v56 = vmul.f32 %v868_v47, %v868_v47 }
  0x44   :  { %v332_v35 = vadd.f32 %v289_v56, %v288_v55  ;;  %v904_v55 = vld [vmem:[#allocation2 + $0xe8] sm:$0xff] }
  0x45   :  { %324 = vadd.xlane.f32.xlu1 %v323_v1  ;;  %v249_v1 = vadd.f32 %v207_v37, %v206_v36  ;;  %v252_v36 = vadd.f32 %v209_v3, %v208_v2  ;;  %v210_v37 = vmul.f32 %v886_v17, %v886_v17  ;;  %1057 = vst [vmem:[#allocation21_spill] sm:$0xff] %v904_v55 }
  0x46   :  { %244 = vadd.xlane.f32.xlu0 %v243_v4  ;;  %v882_v4 = vld [vmem:[#allocation5 + $0xd0] sm:$0xff]  ;;  %v293_v2 = vmul.f32 %v900_v38, %v900_v38 }
  0x47   :  { %1051 = vst [vmem:[#allocation15_spill] sm:$0xff] %v882_v4  ;;  %v290_v9 = vmul.f32 %v882_v4, %v882_v4  ;;  %v916_v4 = vld [vmem:[#allocation5 + $0xf8] sm:$0xff] }
  0x49   :  { %327 = vadd.xlane.f32.xlu1 %v326_v26  ;;  %v888_v26 = vld [vmem:[#allocation2 + $0xd8] sm:$0xff] }
  0x4a   :  { %247 = vadd.xlane.f32.xlu0 %v246_v16  ;;  %1053 = vst [vmem:[#allocation17_spill] sm:$0xff] %v888_v26  ;;  %v291_v16 = vmul.f32 %v884_v5, %v884_v5  ;;  %v211_v47 = vmul.f32 %v888_v26, %v888_v26  ;;  %v213_v5 = vmul.f32 %v904_v55, %v904_v55  ;;  %v914_v26 = vld [vmem:[#allocation5 + $0xf0] sm:$0xff] }
  0x4c   :  { %v335_v56 = vadd.f32 %v291_v16, %v290_v9  ;;  %v255_v3 = vadd.f32 %v211_v47, %v210_v37  ;;  %v920_v9 = vld [vmem:[#allocation2 + $0xf8] sm:$0xff]  ;;  %v295_v47 = vmul.f32 %v916_v4, %v916_v4 }
  0x4d   :  { %330 = vadd.xlane.f32.xlu1 %v329_v54  ;;  %v902_v54 = vld [vmem:[#allocation2 + $0xe0] sm:$0xff]  ;;  %v215_v55 = vmul.f32 %v920_v9, %v920_v9 }
  0x4e   :  { %250 = vadd.xlane.f32.xlu0 %v249_v1  ;;  %1056 = vst [vmem:[#allocation20_spill] sm:$0xff] %v902_v54  ;;  %v292_v1 = vmul.f32 %v898_v49, %v898_v49  ;;  %v212_v48 = vmul.f32 %v902_v54, %v902_v54 }
  0x50   :  { %v338_v16 = vadd.f32 %v293_v2, %v292_v1  ;;  %v258_v37 = vadd.f32 %v213_v5, %v212_v48  ;;  %v107_v1 = vmul.f32 %v684_v8, %v694_v14  ;;  %v110_v48 = vmul.f32 %v718_v30, %v722_v32 }
  0x51   :  { %333 = vadd.xlane.f32.xlu1 %v332_v35  ;;  %v918_v35 = vld [vmem:[#allocation2 + $0xf0] sm:$0xff]  ;;  %v111_v5 = vmul.f32 %v720_v31, %v724_v33  ;;  %v114_v8 = vmul.f32 %v750_v50, %v754_v52  ;;  %v115_v14 = vmul.f32 %v752_v51, %v756_v53  ;;  %v112_v31 = vmul.f32 %v734_v40, %v738_v42 }
  0x52   :  { %253 = vadd.xlane.f32.xlu0 %v252_v36  ;;  %v294_v36 = vmul.f32 %v914_v26, %v914_v26  ;;  %v214_v38 = vmul.f32 %v918_v35, %v918_v35  ;;  %v116_v33 = vmul.f32 %v766_v60, %v770_v62  ;;  %v117_v50 = vmul.f32 %v768_v61, %v772_v63 }
  0x53   :  { %v123_v42 = vmul.f32 %v820_v44, %v824_v46  ;;  %v120_v51 = vmul.f32 %v802_v27, %v806_v29  ;;  %v121_v52 = vmul.f32 %v804_v28, %v808_v34  ;;  %v126_v60 = vmul.f32 %v850_v18, %v854_v24  ;;  %v1060_v27 = vld [vmem:[#allocation16_spill] sm:$0xff]  ;;  %v1061_v34 = vld [vmem:[#allocation13_spill] sm:$0xff]  ;;  %v1066_v24 = vld [vmem:[#allocation18_spill] sm:$0xff] }
  0x54   :  { %v341_v49 = vadd.f32 %v295_v47, %v294_v36  ;;  %v261_v2 = vadd.f32 %v215_v55, %v214_v38  ;;  %v127_v61 = vmul.f32 %v852_v19, %v856_v25  ;;  %v124_v63 = vmul.f32 %v834_v57, %v838_v59  ;;  %v1064_v46 = vld [vmem:[#allocation12_spill] sm:$0xff]  ;;  %v1067_v38 = vld [vmem:[#allocation21_spill] sm:$0xff] }
  0x55   :  { %336 = vadd.xlane.f32.xlu1 %v335_v56  ;;  %v106_v56 = vmul.f32 %v682_v7, %v692_v13  ;;  %v109_v7 = vmul.f32 %v704_v20, %v708_v22  ;;  %v145_v13 = vadd.f32 %v111_v5, %v110_v48  ;;  %v118_v20 = vmul.f32 %v782_v6, %v786_v11  ;;  %v1058_v11 = vld [vmem:[#allocation15_spill] sm:$0xff]  ;;  %v1065_v19 = vld [vmem:[#allocation20_spill] sm:$0xff] }
  0x56   :  { %256 = vadd.xlane.f32.xlu0 %v255_v3  ;;  %v108_v3 = vmul.f32 %v696_v15, %v706_v21  ;;  %v113_v15 = vmul.f32 %v736_v41, %v740_v43  ;;  %v151_v21 = vadd.f32 %v115_v14, %v114_v8  ;;  %v119_v22 = vmul.f32 %v784_v10, %v788_v12 }
  0x57   :  { %v139_v54 = vadd.f32 %v107_v1, %v106_v56  ;;  %v122_v41 = vmul.f32 %v818_v39, %v822_v45  ;;  %v154_v43 = vadd.f32 %v117_v50, %v116_v33  ;;  %v160_v62 = vadd.f32 %v121_v52, %v120_v51  ;;  %v1062_v39 = vld [vmem:[#allocation11_spill] sm:$0xff]  ;;  %v1063_v45 = vld [vmem:[#allocation14_spill] sm:$0xff] }
  0x58   :  { %v142_v30 = vadd.f32 %v109_v7, %v108_v3  ;;  %v148_v32 = vadd.f32 %v113_v15, %v112_v31  ;;  %v157_v40 = vadd.f32 %v119_v22, %v118_v20  ;;  %v125_v6 = vmul.f32 %v836_v58, %v840_v0 }
  0x59   :  { %339 = vadd.xlane.f32.xlu1 %v338_v16  ;;  %v163_v53 = vadd.f32 %v123_v42, %v122_v41  ;;  %v169_v10 = vadd.f32 %v127_v61, %v126_v60  ;;  %v130_v12 = vmul.f32 %v1058_v11, %v886_v17  ;;  %v128_v44 = vmul.f32 %v1062_v39, %v1061_v34 }
  0x5a   :  { %259 = vadd.xlane.f32.xlu0 %v258_v37  ;;  %v166_v29 = vadd.f32 %v125_v6, %v124_v63  ;;  %v129_v18 = vmul.f32 %v1064_v46, %v1063_v45  ;;  %v134_v58 = vmul.f32 %v914_v26, %v918_v35  ;;  %v135_v59 = vmul.f32 %v916_v4, %v920_v9 }
  0x5b   :  { %v132_v25 = vmul.f32 %v1066_v24, %v1065_v19  ;;  %v424_v6 = vlaneseq }
  0x5c   :  { %v172_v0 = vadd.f32 %v129_v18, %v128_v44 }
  0x5d   :  { %342 = vadd.xlane.f32.xlu1 %v341_v49  ;;  %v1068_v49 = vld [vmem:[#allocation19_spill] sm:$0xff] }
  0x5e   :  { %262 = vadd.xlane.f32.xlu0 %v261_v2  ;;  %v133_v17 = vmul.f32 %v1068_v49, %v1067_v38 }
  0x60   :  { %v178_v55 = vadd.f32 %v133_v17, %v132_v25 }
  0x61   :  { %140 = vadd.xlane.f32.xlu1 %v139_v54  ;;  %v181_v54 = vadd.f32 %v135_v59, %v134_v58 }
  0x62   :  { %137 = vadd.xlane.f32.xlu0 %v796_v23  ;;  %v1059_v23 = vld [vmem:[#allocation17_spill] sm:$0xff] }
  0x63   :  { %v131_v28 = vmul.f32 %v1060_v27, %v1059_v23 }
  0x65   :  { %146 = vadd.xlane.f32.xlu1 %v145_v13  ;;  %v175_v57 = vadd.f32 %v131_v28, %v130_v12 }
  0x66   :  { %143 = vadd.xlane.f32.xlu0 %v142_v30 }
  0x69   :  { %152 = vadd.xlane.f32.xlu1 %v151_v21 }
  0x6a   :  { %149 = vadd.xlane.f32.xlu0 %v148_v32 }
  0x6d   :  { %158 = vadd.xlane.f32.xlu1 %v157_v40 }
  0x6e   :  { %155 = vadd.xlane.f32.xlu0 %v154_v43 }
  0x71   :  { %164 = vadd.xlane.f32.xlu1 %v163_v53 }
  0x72   :  { %161 = vadd.xlane.f32.xlu0 %v160_v62 }
  0x75   :  { %170 = vadd.xlane.f32.xlu1 %v169_v10 }
  0x76   :  { %167 = vadd.xlane.f32.xlu0 %v166_v29  ;;  %v991_v29 = vand.u32 127, %v424_v6 }
  0x78   :  { %v430_v58 = vadd.s32 4294967288, %v991_v29  ;;  %v444_v19 = vadd.s32 4294967272, %v991_v29  ;;  %v437_v17 = vadd.s32 4294967280, %v991_v29 }
  0x79   :  { %176 = vadd.xlane.f32.xlu1 %v175_v57  ;;  %v993_v57 = vshrl.u32 %v424_v6, 7 }
  0x7a   :  { %173 = vadd.xlane.f32.xlu0 %v172_v0 }
  0x7d   :  { %182 = vadd.xlane.f32.xlu1 %v181_v54 }
  0x7e   :  { %179 = vadd.xlane.f32.xlu0 %v178_v55  ;;  %v433_v55 = vsub.s32 %v430_v58, %v993_v57  ;;  %v486_v58 = vadd.s32 4294967224, %v991_v29 }
  0xaa   :  { %v298_v16 = vpop.xlane.xlu1 %297 }
  0xab   :  { %v218_v36 = vpop.xlane.xlu0 %217 }
  0xac   :  { %v344_v22 = vmul.f32 %v298_v16, %v218_v36  ;;  %v428_v36 = vsub.s32 %v991_v29, %v993_v57 }
  0xae   :  { %v301_v26 = vpop.xlane.xlu1 %300  ;;  %v360_v41 = vmax.f32 %v344_v22, 1e-16 }
  0xaf   :  { %v221_v35 = vpop.xlane.xlu0 %220 }
  0xb0   :  { %v345_v20 = vmul.f32 %v301_v26, %v221_v35 }
  0xb2   :  { %v304_v47 = vpop.xlane.xlu1 %303  ;;  %v361_v50 = vmax.f32 %v345_v20, 1e-16 }
  0xb3   :  { %v224_v4 = vpop.xlane.xlu0 %223 }
  0xb4   :  { %v346_v42 = vmul.f32 %v304_v47, %v224_v4  ;;  %558 = vrsqrt.f32 %v361_v50  ;;  %v451_v47 = vadd.s32 4294967264, %v991_v29 }
  0xb5   :  { %560 = vrsqrt.f32 %v360_v41 }
  0xb6   :  { %v307_v9 = vpop.xlane.xlu1 %306  ;;  %v362_v60 = vmax.f32 %v346_v42, 1e-16 }
  0xb7   :  { %v227_v37 = vpop.xlane.xlu0 %226 }
  0xb8   :  { %v347_v40 = vmul.f32 %v307_v9, %v227_v37  ;;  %v447_v37 = vsub.s32 %v444_v19, %v993_v57 }
  0xba   :  { %v310_v56 = vpop.xlane.xlu1 %309  ;;  %v363_v52 = vmax.f32 %v347_v40, 1e-16 }
  0xbb   :  { %v230_v1 = vpop.xlane.xlu0 %229 }
  0xbc   :  { %v348_v61 = vmul.f32 %v310_v56, %v230_v1  ;;  %562 = vrsqrt.f32 %v363_v52 }
  0xbd   :  { %564 = vrsqrt.f32 %v362_v60 }
  0xbe   :  { %v313_v2 = vpop.xlane.xlu1 %312  ;;  %v364_v12 = vmax.f32 %v348_v61, 1e-16 }
  0xbf   :  { %v233_v48 = vpop.xlane.xlu0 %232 }
  0xc0   :  { %v349_v53 = vmul.f32 %v313_v2, %v233_v48 }
  0xc1   :  { %v559_v24 = vpop.eup %558 }
  0xc2   :  { %v316_v5 = vpop.xlane.xlu1 %315  ;;  %v365_v10 = vmax.f32 %v349_v53, 1e-16  ;;  %v561_v54 = vpop.eup %560 }
  0xc3   :  { %v236_v3 = vpop.xlane.xlu0 %235 }
  0xc4   :  { %v350_v23 = vmul.f32 %v316_v5, %v236_v3  ;;  %566 = vrsqrt.f32 %v365_v10  ;;  %v440_v5 = vsub.s32 %v437_v17, %v993_v57  ;;  %v493_v17 = vadd.s32 4294967216, %v991_v29 }
  0xc5   :  { %568 = vrsqrt.f32 %v364_v12 }
  0xc6   :  { %v319_v7 = vpop.xlane.xlu1 %318  ;;  %v366_v44 = vmax.f32 %v350_v23, 1e-16 }
  0xc7   :  { %v239_v13 = vpop.xlane.xlu0 %238 }
  0xc8   :  { %v351_v11 = vmul.f32 %v319_v7, %v239_v13 }
  0xc9   :  { %v563_v56 = vpop.eup %562 }
  0xca   :  { %v322_v8 = vpop.xlane.xlu1 %321  ;;  %v367_v34 = vmax.f32 %v351_v11, 1e-16  ;;  %v565_v3 = vpop.eup %564  ;;  %v479_v11 = vadd.s32 4294967232, %v991_v29 }
  0xcb   :  { %v242_v14 = vpop.xlane.xlu0 %241 }
  0xcc   :  { %v352_v45 = vmul.f32 %v322_v8, %v242_v14  ;;  %570 = vrsqrt.f32 %v367_v34  ;;  %v482_v19 = vsub.s32 %v479_v11, %v993_v57 }
  0xcd   :  { %572 = vrsqrt.f32 %v366_v44 }
  0xce   :  { %v325_v30 = vpop.xlane.xlu1 %324  ;;  %v368_v25 = vmax.f32 %v352_v45, 1e-16 }
  0xcf   :  { %v245_v31 = vpop.xlane.xlu0 %244 }
  0xd0   :  { %v353_v39 = vmul.f32 %v325_v30, %v245_v31  ;;  %v458_v30 = vadd.s32 4294967256, %v991_v29 }
  0xd2   :  { %v328_v15 = vpop.xlane.xlu1 %327  ;;  %v369_v59 = vmax.f32 %v353_v39, 1e-16  ;;  %v461_v53 = vsub.s32 %v458_v30, %v993_v57 }
  0xd3   :  { %v248_v21 = vpop.xlane.xlu0 %247 }
  0xd4   :  { %v354_v38 = vmul.f32 %v328_v15, %v248_v21  ;;  %574 = vrsqrt.f32 %v369_v59  ;;  %v454_v15 = vsub.s32 %v451_v47, %v993_v57  ;;  %v472_v21 = vadd.s32 4294967240, %v991_v29 }
  0xd5   :  { %576 = vrsqrt.f32 %v368_v25 }
  0xd6   :  { %v331_v32 = vpop.xlane.xlu1 %330  ;;  %v370_v1 = vmax.f32 %v354_v38, 1e-16  ;;  %v475_v10 = vsub.s32 %v472_v21, %v993_v57 }
  0xd7   :  { %v251_v33 = vpop.xlane.xlu0 %250 }
  0xd8   :  { %v355_v0 = vmul.f32 %v331_v32, %v251_v33  ;;  %v465_v32 = vadd.s32 4294967248, %v991_v29  ;;  %v567_v33 = vpop.eup %566 }
  0xda   :  { %v334_v43 = vpop.xlane.xlu1 %333  ;;  %v371_v4 = vmax.f32 %v355_v0, 1e-16  ;;  %v468_v34 = vsub.s32 %v465_v32, %v993_v57 }
  0xdb   :  { %v254_v51 = vpop.xlane.xlu0 %253 }
  0xdc   :  { %v356_v2 = vmul.f32 %v334_v43, %v254_v51  ;;  %578 = vrsqrt.f32 %v371_v4  ;;  %v569_v43 = vpop.eup %568 }
  0xdd   :  { %580 = vrsqrt.f32 %v370_v1  ;;  %v571_v12 = vpop.eup %570 }
  0xde   :  { %v337_v62 = vpop.xlane.xlu1 %336  ;;  %v372_v50 = vmax.f32 %v356_v2, 1e-16  ;;  %v573_v39 = vpop.eup %572  ;;  %v496_v2 = vsub.s32 %v493_v17, %v993_v57 }
  0xdf   :  { %v257_v63 = vpop.xlane.xlu0 %256 }
  0xe0   :  { %v357_v9 = vmul.f32 %v337_v62, %v257_v63 }
  0xe2   :  { %v340_v27 = vpop.xlane.xlu1 %339  ;;  %v373_v20 = vmax.f32 %v357_v9, 1e-16 }
  0xe3   :  { %v260_v28 = vpop.xlane.xlu0 %259 }
  0xe4   :  { %v358_v40 = vmul.f32 %v340_v27, %v260_v28  ;;  %582 = vrsqrt.f32 %v373_v20 }
  0xe5   :  { %584 = vrsqrt.f32 %v372_v50 }
  0xe6   :  { %v343_v46 = vpop.xlane.xlu1 %342  ;;  %v374_v23 = vmax.f32 %v358_v40, 1e-16 }
  0xe7   :  { %v263_v18 = vpop.xlane.xlu0 %262 }
  0xe8   :  { %v359_v22 = vmul.f32 %v343_v46, %v263_v18 }
  0xea   :  { %v141_v49 = vpop.xlane.xlu1 %140  ;;  %v375_v6 = vmax.f32 %v359_v22, 1e-16 }
  0xeb   :  { %v393_v16 = vmul.f32 %v559_v24, %v141_v49  ;;  %v138_v26 = vpop.xlane.xlu0 %137  ;;  %v575_v24 = vpop.eup %574  ;;  %v500_v49 = vadd.s32 4294967208, %v991_v29 }
  0xec   :  { %v392_v35 = vmul.f32 %v561_v54, %v138_v26  ;;  %586 = vrsqrt.f32 %v375_v6  ;;  %v577_v54 = vpop.eup %576 }
  0xed   :  { %v434_v7 = vrot.slane %v393_v16, %v433_v55  ;;  %588 = vrsqrt.f32 %v374_v23  ;;  %v579_v9 = vpop.eup %578 }
  0xee   :  { %v147_v48 = vpop.xlane.xlu1 %146  ;;  %v429_v13 = vrot.slane %v392_v35, %v428_v36  ;;  %v489_v36 = vsub.s32 %v486_v58, %v993_v57 }
  0xef   :  { %v395_v8 = vmul.f32 %v563_v56, %v147_v48  ;;  %v144_v14 = vpop.xlane.xlu0 %143  ;;  %v503_v56 = vsub.s32 %v500_v49, %v993_v57  ;;  %v507_v48 = vadd.s32 4294967200, %v991_v29 }
  0xf0   :  { %v394_v31 = vmul.f32 %v565_v3, %v144_v14  ;;  %v436_v51 = vsel %vm435_vm0, %v434_v7, %v429_v13  ;;  %v514_v14 = vadd.s32 4294967192, %v991_v29 }
  0xf1   :  { %v448_v52 = vrot.slane %v395_v8, %v447_v37  ;;  %v510_v32 = vsub.s32 %v507_v48, %v993_v57 }
  0xf2   :  { %v441_v41 = vrot.slane %v394_v31, %v440_v5  ;;  %v153_v42 = vpop.xlane.xlu1 %152  ;;  %v581_v5 = vpop.eup %580 }
  0xf3   :  { %v397_v60 = vmul.f32 %v567_v33, %v153_v42  ;;  %v150_v61 = vpop.xlane.xlu0 %149  ;;  %v583_v21 = vpop.eup %582  ;;  %v521_v33 = vadd.s32 4294967184, %v991_v29  ;;  %v517_v42 = vsub.s32 %v514_v14, %v993_v57 }
  0xf4   :  { %v443_v62 = vsel %vm442_vm1, %v441_v41, %v436_v51  ;;  %v396_v63 = vmul.f32 %v569_v43, %v150_v61  ;;  %v585_v50 = vpop.eup %584 }
  0xf5   :  { %v462_v44 = vrot.slane %v397_v60, %v461_v53  ;;  %v450_v45 = vsel %vm449_vm2, %v448_v52, %v443_v62  ;;  %v524_v6 = vsub.s32 %v521_v33, %v993_v57 }
  0xf6   :  { %v455_v27 = vrot.slane %v396_v63, %v454_v15  ;;  %v159_v28 = vpop.xlane.xlu1 %158  ;;  %v528_v15 = vadd.s32 4294967176, %v991_v29 }
  0xf7   :  { %v399_v46 = vmul.f32 %v571_v12, %v159_v28  ;;  %v156_v18 = vpop.xlane.xlu0 %155 }
  0xf8   :  { %v457_v59 = vsel %vm456_vm3, %v455_v27, %v450_v45  ;;  %v398_v0 = vmul.f32 %v573_v39, %v156_v18  ;;  %v531_v60 = vsub.s32 %v528_v15, %v993_v57 }
  0xf9   :  { %v476_v55 = vrot.slane %v399_v46, %v475_v10  ;;  %v464_v16 = vsel %vm463_vm4, %v462_v44, %v457_v59  ;;  %v587_v61 = vpop.eup %586 }
  0xfa   :  { %v469_v25 = vrot.slane %v398_v0, %v468_v34  ;;  %v165_v38 = vpop.xlane.xlu1 %164  ;;  %v589_v10 = vpop.eup %588 }
  0xfb   :  { %v401_v26 = vmul.f32 %v575_v24, %v165_v38  ;;  %v162_v35 = vpop.xlane.xlu0 %161 }
  0xfc   :  { %v471_v47 = vsel %vm470_vm5, %v469_v25, %v464_v16  ;;  %v400_v4 = vmul.f32 %v577_v54, %v162_v35 }
  0xfd   :  { %v490_v3 = vrot.slane %v401_v26, %v489_v36  ;;  %v478_v7 = vsel %vm477_vm6, %v476_v55, %v471_v47 }
  0xfe   :  { %v483_v37 = vrot.slane %v400_v4, %v482_v19  ;;  %v171_v1 = vpop.xlane.xlu1 %170 }
  0xff   :  { %v403_v13 = vmul.f32 %v579_v9, %v171_v1  ;;  %v168_v8 = vpop.xlane.xlu0 %167 }
 0x100   :  { %v485_v30 = vsel %vm484_vm7, %v483_v37, %v478_v7  ;;  %v402_v31 = vmul.f32 %v581_v5, %v168_v8 }
 0x101   :  { %v504_v40 = vrot.slane %v403_v13, %v503_v56  ;;  %v492_v41 = vsel %vm491_vm8, %v490_v3, %v485_v30 }
 0x102   :  { %v497_v20 = vrot.slane %v402_v31, %v496_v2  ;;  %v177_v22 = vpop.xlane.xlu1 %176 }
 0x103   :  { %v405_v43 = vmul.f32 %v583_v21, %v177_v22  ;;  %v174_v51 = vpop.xlane.xlu0 %173 }
 0x104   :  { %v499_v52 = vsel %vm498_vm9, %v497_v20, %v492_v41  ;;  %v404_v53 = vmul.f32 %v585_v50, %v174_v51 }
 0x105   :  { %v518_v29 = vrot.slane %v405_v43, %v517_v42  ;;  %v506_v11 = vsel %vm505_vm10, %v504_v40, %v499_v52 }
 0x106   :  { %v511_v62 = vrot.slane %v404_v53, %v510_v32  ;;  %v183_v63 = vpop.xlane.xlu1 %182 }
 0x107   :  { %v407_v12 = vmul.f32 %v587_v61, %v183_v63  ;;  %v180_v23 = vpop.xlane.xlu0 %179 }
 0x108   :  { %v513_v27 = vsel %vm512_vm11, %v511_v62, %v506_v11  ;;  %v406_v28 = vmul.f32 %v589_v10, %v180_v23 }
 0x109   :  { %v532_v34 = vrot.slane %v407_v12, %v531_v60  ;;  %v520_v44 = vsel %vm519_vm12, %v518_v29, %v513_v27 }
 0x10a   :  { %v525_v39 = vrot.slane %v406_v28, %v524_v6 }
 0x10c   :  { %v527_v45 = vsel %vm526_vm13, %v525_v39, %v520_v44 }
 0x10d   :  { %v534_v46 = vsel %vm533_vm14, %v532_v34, %v527_v45 }
 0x10e   :  { %536 = vst [vmem:[#allocation7] sm:$0x1] %v534_v46 }
 0x10f   :  { %641 = shalt.err (!%p638_p0)
}
 0x110   :  { %546 = dma.vmem_to_hbm [thread:$0]  %s544_s1, 16, %s1035_s2, [#allocation4]  }
 0x111   :  { %654 = dma.done.wait [#allocation4], 16  }
 0x112   :  { %655 = vsyncadd [#allocation4], 4294967280 }
 0x113   :  { %550 = vsyncpa [#allocation3], 1 }
 0x114   :  { %551 = vsyncpa [#allocation6], 1 }
 0x115   :  { %552 = vsyncpa [#allocation4], 1 }

</bundles_post_ra>
